<compile_context>
chip_gen: v7x
topology: tpu7x:2x2x1
jax: 0.10.0
libtpu: 0.0.40
codegen_flags: <defaults>
</compile_context>

<pallas_src>
import jax
import jax.numpy as jnp
from jax.experimental import pallas as pl
from jax.experimental.pallas import tpu as pltpu

NEG_SLOPE = 0.01  # nn.LeakyReLU default


def _leaky_relu(x):
    return jnp.where(x > 0, x, NEG_SLOPE * x)


def _round_up(x, m):
    return (x + m - 1) // m * m


def decoder_kernel(x_ref,
                   w1_ref, b1_ref,
                   w2_ref, b2_ref,
                   w3_ref, b3_ref,
                   o_ref):
    """Fused MLP (Linear+LeakyReLU, Linear+LeakyReLU, Linear) + sigmoid.

    Matmuls: bf16 operands, f32 accumulation on the MXU.
    Activations / bias adds: f32 on the VPU; sigmoid (exp/recip) on the EUP.
    One batch tile per grid step.
    """
    x = x_ref[...].astype(jnp.bfloat16)                      # [TB, latent] bf16 LHS
    h = jnp.dot(x, w1_ref[...],
                preferred_element_type=jnp.float32) + b1_ref[...]
    h = _leaky_relu(h)                                       # f32
    h = jnp.dot(h.astype(jnp.bfloat16), w2_ref[...],
                preferred_element_type=jnp.float32) + b2_ref[...]
    h = _leaky_relu(h)                                       # f32
    h = jnp.dot(h.astype(jnp.bfloat16), w3_ref[...],
                preferred_element_type=jnp.float32) + b3_ref[...]
    o_ref[...] = jax.nn.sigmoid(h).astype(o_ref.dtype)       # [TB, out_pad]


def _choose_batch_tile(B):
    """Pick an MXU-friendly batch tile; keep >=2 grid steps when possible."""
    pb = _round_up(B, 8)
    if pb >= 256:
        return 128                      # MXU-native M, grid >= 2
    if pb >= 16 and (pb // 2) % 8 == 0:
        return pb // 2                  # 2 parallel grid steps for dual-TC v7x
    return pb                           # tiny batch: single step


def decoder_forward(latents, params, obs_dim, *, batch_tile=None):
    """latents: [B, latent_dim] float32 -> [B, H, W] float32 in (0, 1)."""
    (w1, b1), (w2, b2), (w3, b3) = params
    B, latent_dim = latents.shape
    h1 = w1.shape[1]
    h2 = w2.shape[1]
    out_flat = w3.shape[1]
    H, W = obs_dim
    assert out_flat == H * W

    # ---- batch tiling: pad B up to a multiple of the (8-aligned) tile --------
    if batch_tile is None:
        batch_tile = _choose_batch_tile(B)
    assert batch_tile % 8 == 0
    padded_B = _round_up(B, batch_tile)
    if padded_B != B:
        latents = jnp.pad(latents, ((0, padded_B - B), (0, 0)))

    # ---- lane-dense output: pad out_flat up to a multiple of 128 -------------
    out_pad = _round_up(out_flat, 128)
    if out_pad != out_flat:
        w3 = jnp.pad(w3, ((0, 0), (0, out_pad - out_flat)))
        b3 = jnp.pad(b3, ((0, 0), (0, out_pad - out_flat)))

    # ---- bf16 matmul operands (cast once, outside the kernel) ----------------
    w1b = w1.astype(jnp.bfloat16)
    w2b = w2.astype(jnp.bfloat16)
    w3b = w3.astype(jnp.bfloat16)
    # Biases stay f32 (added post-accumulation on the VPU).

    grid = (padded_B // batch_tile,)

    def full(shape):
        # Grid-invariant full-array block (weights / biases).
        return pl.BlockSpec(shape, lambda i: (0, 0))

    out2d = pl.pallas_call(
        decoder_kernel,
        out_shape=jax.ShapeDtypeStruct((padded_B, out_pad), jnp.float32),
        grid_spec=pltpu.PrefetchScalarGridSpec(
            num_scalar_prefetch=0,
            grid=grid,
            in_specs=[
                pl.BlockSpec((batch_tile, latent_dim), lambda i: (i, 0)),  # x tile
                full((latent_dim, h1)), full((1, h1)),                     # layer 1
                full((h1, h2)),         full((1, h2)),                     # layer 2
                full((h2, out_pad)),    full((1, out_pad)),                # layer 3
            ],
            out_specs=pl.BlockSpec((batch_tile, out_pad), lambda i: (i, 0)),
        ),
        compiler_params=pltpu.CompilerParams(
            dimension_semantics=("parallel",)),
    )(latents, w1b, b1, w2b, b2, w3b, b3)

    # Strip padding; glue: torch nn.Unflatten(-1, obs_dim)
    return out2d[:B, :out_flat].reshape(B, H, W)


def init_params(key, latent_dim, hidden_dims, obs_dim_flat):
    """Deterministic synthetic weights (shapes match the nn.Linear stack)."""
    dims = [latent_dim] + list(hidden_dims) + [obs_dim_flat]
    params = []
    for din, dout in zip(dims[:-1], dims[1:]):
        key, kw, kb = jax.random.split(key, 3)
        scale = 1.0 / jnp.sqrt(jnp.float32(din))
        w = jax.random.uniform(kw, (din, dout), jnp.float32, -scale, scale)
        b = jax.random.uniform(kb, (1, dout), jnp.float32, -scale, scale)
        params.append((w, b))
    return params


def reference_forward(latents, params, obs_dim):
    """Pure-JAX f32 reference of the same forward pass (correctness check)."""
    (w1, b1), (w2, b2), (w3, b3) = params
    h = _leaky_relu(latents @ w1 + b1)
    h = _leaky_relu(h @ w2 + b2)
    h = h @ w3 + b3
    B = latents.shape[0]
    return jax.nn.sigmoid(h).reshape(B, obs_dim[0], obs_dim[1])


if __name__ == "__main__":
    # Small shapes consistent with the module:
    #   latent_dim=8, hidden_dims=[32, 64], obs_dim=(16, 16) -> flat=256
    B = 32
    latent_dim = 8
    hidden_dims = [32, 64]
    obs_dim = (16, 16)

    key = jax.random.PRNGKey(0)
    key, klat = jax.random.split(key)
    latents = jax.random.normal(klat, (B, latent_dim), jnp.float32)
    params = init_params(key, latent_dim, hidden_dims, obs_dim[0] * obs_dim[1])

    out = decoder_forward(latents, params, obs_dim)
    out = jax.block_until_ready(out)

    ref = reference_forward(latents, params, obs_dim)
    assert out.shape == (B, obs_dim[0], obs_dim[1])
    # bf16 matmul operands (f32 accumulation) => looser tolerance than pure f32.
    assert jnp.allclose(out, ref, atol=2e-2, rtol=0.0), "mismatch vs JAX reference"

    print("KERNEL_OK")
</pallas_src>

<mosaic_0001>
module attributes {stable_mosaic.version = 11 : i64} {
  func.func @decoder_kernel(%arg0: i32, %arg1: memref<16x8xf32, #tpu.memory_space<vmem>>, %arg2: memref<8x32xbf16, #tpu.memory_space<vmem>>, %arg3: memref<1x32xf32, #tpu.memory_space<vmem>>, %arg4: memref<32x64xbf16, #tpu.memory_space<vmem>>, %arg5: memref<1x64xf32, #tpu.memory_space<vmem>>, %arg6: memref<64x256xbf16, #tpu.memory_space<vmem>>, %arg7: memref<1x256xf32, #tpu.memory_space<vmem>>, %arg8: memref<16x256xf32, #tpu.memory_space<vmem>>) attributes {dimension_semantics = [#tpu.dimension_semantics<parallel>], iteration_bounds = array<i64: 2>, scalar_prefetch = 0 : i64, scratch_operands = 0 : i64, tpu.core_type = #tpu.core_type<tc>, window_params = [{transform_indices = @transform_0, window_bounds = array<i64: 16, 8>}, {pipeline_mode = #tpu.pipeline_mode<synchronous>, transform_indices = @transform_1, window_bounds = array<i64: 8, 32>}, {pipeline_mode = #tpu.pipeline_mode<synchronous>, transform_indices = @transform_2, window_bounds = array<i64: 1, 32>}, {pipeline_mode = #tpu.pipeline_mode<synchronous>, transform_indices = @transform_3, window_bounds = array<i64: 32, 64>}, {pipeline_mode = #tpu.pipeline_mode<synchronous>, transform_indices = @transform_4, window_bounds = array<i64: 1, 64>}, {pipeline_mode = #tpu.pipeline_mode<synchronous>, transform_indices = @transform_5, window_bounds = array<i64: 64, 256>}, {pipeline_mode = #tpu.pipeline_mode<synchronous>, transform_indices = @transform_6, window_bounds = array<i64: 1, 256>}, {transform_indices = @transform_7, window_bounds = array<i64: 16, 256>}]} {
    %c0 = arith.constant 0 : index
    %c0_0 = arith.constant 0 : index
    %0 = vector.load %arg1[%c0, %c0_0] : memref<16x8xf32, #tpu.memory_space<vmem>>, vector<16x8xf32>
    %1 = arith.truncf %0 : vector<16x8xf32> to vector<16x8xbf16>
    %c0_1 = arith.constant 0 : index
    %c0_2 = arith.constant 0 : index
    %2 = vector.load %arg2[%c0_1, %c0_2] : memref<8x32xbf16, #tpu.memory_space<vmem>>, vector<8x32xbf16>
    %cst = arith.constant dense<0.000000e+00> : vector<16x32xf32>
    %3 = tpu.matmul %1, %2, %cst {dimension_numbers = #tpu.dot_dimension_numbers<[1], [0], [0], [1], [0, 0, 1, 1], [], []>} : vector<16x8xbf16>, vector<8x32xbf16>, vector<16x32xf32> -> vector<16x32xf32>
    %c0_3 = arith.constant 0 : index
    %c0_4 = arith.constant 0 : index
    %4 = vector.load %arg3[%c0_3, %c0_4] : memref<1x32xf32, #tpu.memory_space<vmem>>, vector<1x32xf32>
    %5 = vector.broadcast %4 : vector<1x32xf32> to vector<16x32xf32>
    %6 = arith.addf %3, %5 : vector<16x32xf32>
    %cst_5 = arith.constant 0.000000e+00 : f32
    %7 = vector.broadcast %cst_5 : f32 to vector<16x32xf32>
    %8 = arith.cmpf ogt, %6, %7 : vector<16x32xf32>
    %cst_6 = arith.constant 0.00999999977 : f32
    %9 = vector.broadcast %cst_6 : f32 to vector<16x32xf32>
    %10 = arith.mulf %9, %6 : vector<16x32xf32>
    %11 = arith.select %8, %6, %10 : vector<16x32xi1>, vector<16x32xf32>
    %12 = arith.truncf %11 : vector<16x32xf32> to vector<16x32xbf16>
    %c0_7 = arith.constant 0 : index
    %c0_8 = arith.constant 0 : index
    %13 = vector.load %arg4[%c0_7, %c0_8] : memref<32x64xbf16, #tpu.memory_space<vmem>>, vector<32x64xbf16>
    %cst_9 = arith.constant dense<0.000000e+00> : vector<16x64xf32>
    %14 = tpu.matmul %12, %13, %cst_9 {dimension_numbers = #tpu.dot_dimension_numbers<[1], [0], [0], [1], [0, 0, 1, 1], [], []>} : vector<16x32xbf16>, vector<32x64xbf16>, vector<16x64xf32> -> vector<16x64xf32>
    %c0_10 = arith.constant 0 : index
    %c0_11 = arith.constant 0 : index
    %15 = vector.load %arg5[%c0_10, %c0_11] : memref<1x64xf32, #tpu.memory_space<vmem>>, vector<1x64xf32>
    %16 = vector.broadcast %15 : vector<1x64xf32> to vector<16x64xf32>
    %17 = arith.addf %14, %16 : vector<16x64xf32>
    %cst_12 = arith.constant 0.000000e+00 : f32
    %18 = vector.broadcast %cst_12 : f32 to vector<16x64xf32>
    %19 = arith.cmpf ogt, %17, %18 : vector<16x64xf32>
    %cst_13 = arith.constant 0.00999999977 : f32
    %20 = vector.broadcast %cst_13 : f32 to vector<16x64xf32>
    %21 = arith.mulf %20, %17 : vector<16x64xf32>
    %22 = arith.select %19, %17, %21 : vector<16x64xi1>, vector<16x64xf32>
    %23 = arith.truncf %22 : vector<16x64xf32> to vector<16x64xbf16>
    %c0_14 = arith.constant 0 : index
    %c0_15 = arith.constant 0 : index
    %24 = vector.load %arg6[%c0_14, %c0_15] : memref<64x256xbf16, #tpu.memory_space<vmem>>, vector<64x256xbf16>
    %cst_16 = arith.constant dense<0.000000e+00> : vector<16x256xf32>
    %25 = tpu.matmul %23, %24, %cst_16 {dimension_numbers = #tpu.dot_dimension_numbers<[1], [0], [0], [1], [0, 0, 1, 1], [], []>} : vector<16x64xbf16>, vector<64x256xbf16>, vector<16x256xf32> -> vector<16x256xf32>
    %c0_17 = arith.constant 0 : index
    %c0_18 = arith.constant 0 : index
    %26 = vector.load %arg7[%c0_17, %c0_18] : memref<1x256xf32, #tpu.memory_space<vmem>>, vector<1x256xf32>
    %27 = vector.broadcast %26 : vector<1x256xf32> to vector<16x256xf32>
    %28 = arith.addf %25, %27 : vector<16x256xf32>
    %29 = arith.negf %28 : vector<16x256xf32>
    %30 = math.exp %29 : vector<16x256xf32>
    %cst_19 = arith.constant 1.000000e+00 : f32
    %31 = vector.broadcast %cst_19 : f32 to vector<16x256xf32>
    %32 = arith.addf %31, %30 : vector<16x256xf32>
    %33 = arith.divf %31, %32 : vector<16x256xf32>
    %c0_20 = arith.constant 0 : index
    %c0_21 = arith.constant 0 : index
    %34 = vector.load %arg8[%c0_20, %c0_21] : memref<16x256xf32, #tpu.memory_space<vmem>>, vector<16x256xf32>
    tpu.vector_store %arg8[%c0_20, %c0_21], %33 {strides = array<i32>} : memref<16x256xf32, #tpu.memory_space<vmem>>, vector<16x256xf32>,
    return
  }
  func.func @transform_0(%arg0: i32) -> (i32, i32) {
    %c0_i32 = arith.constant 0 : i32
    %c0_i32_0 = arith.constant 0 : i32
    return %arg0, %c0_i32 : i32, i32
  }
  func.func @transform_1(%arg0: i32) -> (i32, i32) {
    %c0_i32 = arith.constant 0 : i32
    %c0_i32_0 = arith.constant 0 : i32
    %c0_i32_1 = arith.constant 0 : i32
    return %c0_i32, %c0_i32_0 : i32, i32
  }
  func.func @transform_2(%arg0: i32) -> (i32, i32) {
    %c0_i32 = arith.constant 0 : i32
    %c0_i32_0 = arith.constant 0 : i32
    %c0_i32_1 = arith.constant 0 : i32
    return %c0_i32, %c0_i32_0 : i32, i32
  }
  func.func @transform_3(%arg0: i32) -> (i32, i32) {
    %c0_i32 = arith.constant 0 : i32
    %c0_i32_0 = arith.constant 0 : i32
    %c0_i32_1 = arith.constant 0 : i32
    return %c0_i32, %c0_i32_0 : i32, i32
  }
  func.func @transform_4(%arg0: i32) -> (i32, i32) {
    %c0_i32 = arith.constant 0 : i32
    %c0_i32_0 = arith.constant 0 : i32
    %c0_i32_1 = arith.constant 0 : i32
    return %c0_i32, %c0_i32_0 : i32, i32
  }
  func.func @transform_5(%arg0: i32) -> (i32, i32) {
    %c0_i32 = arith.constant 0 : i32
    %c0_i32_0 = arith.constant 0 : i32
    %c0_i32_1 = arith.constant 0 : i32
    return %c0_i32, %c0_i32_0 : i32, i32
  }
  func.func @transform_6(%arg0: i32) -> (i32, i32) {
    %c0_i32 = arith.constant 0 : i32
    %c0_i32_0 = arith.constant 0 : i32
    %c0_i32_1 = arith.constant 0 : i32
    return %c0_i32, %c0_i32_0 : i32, i32
  }
  func.func @transform_7(%arg0: i32) -> (i32, i32) {
    %c0_i32 = arith.constant 0 : i32
    %c0_i32_0 = arith.constant 0 : i32
    return %arg0, %c0_i32 : i32, i32
  }
}

</mosaic_0001>

<bundles_post_ra>
// kernel: tpu_custom_call.1
= control target key start
LH: loop header
LB: loop body
LE: loop exit
PB: predicated region body
PF: predicated region fallthrough
CT: control target
= control target key end

     0   :  { %12 = vsyncpa [#allocation3], 0  ;;  %s1106_s0 = inlined_call_operand.vmem [shape: f32[32,8], index: 0, kind: input, shape index: {}]   ;;  %s1107_s1 = inlined_call_operand.vmem [shape: bf16[8,32], index: 1, kind: input, shape index: {}]   ;;  %s1108_s2 = inlined_call_operand.vmem [shape: f32[1,32], index: 2, kind: input, shape index: {}]   ;;  %s1109_s3 = inlined_call_operand.vmem [shape: bf16[32,64], index: 3, kind: input, shape index: {}]   ;;  %s1110_s4 = inlined_call_operand.vmem [shape: f32[1,64], index: 4, kind: input, shape index: {}]   ;;  %s1111_s5 = inlined_call_operand.hbm [shape: bf16[64,256], index: 5, kind: input, shape index: {}]   ;;  %s1112_s6 = inlined_call_operand.vmem [shape: f32[1,256], index: 6, kind: input, shape index: {}]   ;;  %s1113_s7 = inlined_call_operand.hbm [shape: f32[32,256], index: 7, kind: output, shape index: {}]  }
   0x1   :  { %13 = vsyncpa [#allocation4], 0 }
   0x2   :  { %15 = vsyncpa [#allocation4 + $0x1], 0  ;;  %s949_s24 = smov 0   ;;  %s951_s25 = smov 0  }
   0x3   :  { %s953_s26 = smov 0   ;;  %s955_s27 = smov 0  }
   0x4 LB: > { %s970_s28 = sadd.s32 4294967295, %s898_s27   ;;  %s662_s29 = sadd.s32 4294967294, %s898_s27   ;;  %s898_s27 = sphi %s955_s27, %s1129_s27   ;;  %s894_s26 = sphi %s953_s26, %s1128_s26   ;;  %s890_s25 = sphi %s951_s25, %s1127_s25   ;;  %s886_s24 = sphi %s949_s24, %s1126_s24  }
   0x5   : > { %s974_s30 = sadd.s32 1, %s898_s27   ;;  %s180_s8 = sadd.s32 1, %s894_s26 }
   0x6   : > { %s177_s9 = ssub.s32 %s898_s27, %s974_s30  ;;  %p190_p0 = scmp.ne.s32.totalorder %s894_s26, %s890_s25 }
   0x7   : > { %p178_p1 = scmp.eq.s32.totalorder %s177_s9, 0  ;;  %p191_p2 = scmp.eq.s32.totalorder %s970_s28, 1 }
   0x8   : > { %p196_p3 = scmp.ne.s32.totalorder %s890_s25, %s886_s24  ;;  %p197_p4 = scmp.eq.s32.totalorder %s662_s29, 1 }
   0x9   : > { %s985_s10 = scalar_select %p178_p1, %s894_s26, %s180_s8  }
   0xa   : > { %p987_p5 = por %p191_p2, %p190_p0  ;;  %p991_p6 = por %p197_p4, %p196_p3 }
   0xb   : > { %p663_p7 = scmp.ge.s32.totalorder %s898_s27, 1  ;;  %p204_p8 = scmp.lt.s32.totalorder %s898_s27, 3 }
   0xc   : > { %s1117_s11 = scalar_select %p987_p5, 1, 0 }
   0xd   : > { %s1118_s12 = scalar_select %p991_p6, 1, 0 }
   0xe   : > { %p1114_p9 = scmp.eq.s32.totalorder %s970_s28, 0  ;;  %p998_p10 = pnand %p663_p7, %p204_p8 }
   0xf   : > { %s900_s14 = smov [#allocation2]   ;;  %s804_s19 = scalar_lea.hbm %s1111_s5, 1024 }
  0x10   : > { %s1119_s13 = scalar_select %p998_p10, 1, 0 }
  0x11   : > { %s228_s15 = sshll.u32 %s900_s14, 4  ;;  %p723_p11 = pneg %p998_p10  ;;  %s229_s15 = int_to_ptr.vmem [resolvable:$true] %s228_s15 }
  0x12   : > { %p805_p13 = scmp.ne.s32.totalorder %s1111_s5, %s804_s19  ;;  %p811_p3 = scmp.lt.u32.totalorder %s804_s19, %s1111_s5 }
  0x13   : > { %p1006_p12 = pnand %p1114_p9, %p723_p11 }
  0x15   : > { %p806_p0 = pneg %p1006_p12 }
  0x17   : > { %p807_p1 = pnand %p806_p0, %p805_p13 }
  0x19   : > { %p808_p2 = pneg %p807_p1 }
  0x1b   : > { %p813_p4 = pnand %p811_p3, %p808_p2 }
  0x1d   : > { %816 = shalt.err (!%p813_p4)
}
  0x1e   : > { %s817_s29 = scalar_lea.vmem %s229_s15, 1024  ;;  %p825_p9 = scmp.lt.s32.totalorder %s229_s15, %s229_s15 }
  0x1f   : > { %p818_p7 = scmp.ne.s32.totalorder %s229_s15, %s817_s29  ;;  %p826_p6 = scmp.lt.s32.totalorder %s817_s29, %s817_s29 }
  0x21   : > { %p820_p8 = pnand %p818_p7, %p806_p0  ;;  %p827_p5 = por %p826_p6, %p825_p9 }
  0x23   : > { %p821_p11 = pneg %p820_p8 }
  0x25   : > { %p828_p10 = pnand %p827_p5, %p821_p11 }
  0x27   : > { %831 = shalt.err (!%p828_p10)
}
  0x28   : > { %s901_s8 = smov 128   ;;  %s902_s9 = smov 8  }
  0x29   : > { %726 = dma.hbm_to_vmem [thread:$0]  (!%p1006_p12), %s1111_s5, 1024, %s229_s15, [#allocation3], %s901_s8, %s901_s8, %s902_s9  }
  0x2a   : > { %p1121_p13 = scmp.ne.s32.totalorder %s1119_s13, 0 }
  0x2b   : > { %p1122_p1 = scmp.eq.s32.totalorder (!%p1121_p13), %s970_s28, 0 }
  0x2c   : > { %256 = sbr.rel (%p1121_p13) target bundleno = 761 (0x2f9), region = 48 }
  0x33   : > { %877 = dma.done.wait (%p1122_p1), [#allocation3], 1024   ;;  %p1123_p0 = pmov %p1122_p1 }
  0x34   : > { %s669_s18 = sshll.u32 %s970_s28, 1  ;;  %v903_v0 = vmov 0.0   ;;  %vm904_vm0 = vmmov 0   ;;  %vm311_vm1 = vcmask 1043456   ;;  %v299_v1 = vld [vmem:[%s1107_s1] sm:$0xf]  ;;  %v448_v41 = vlaneseq }
  0x35   : > { %879 = vsyncadd (%p1123_p0), [#allocation3], 4294966272  ;;  %703 = vmatprep.subr.bf16.mxu1 %v903_v0  ;;  %705 = vmatprep.mubr.msk.bf16.mxu1 %vm904_vm0, %v903_v0  ;;  %p289_p5 = scmp.lt.s32.totalorder %s669_s18, 3  ;;  %v313_v4 = vsel %vm311_vm1, %v299_v1, 0  ;;  %vm307_vm2 = vcmask 64512   ;;  %v774_v6 = vld [vmem:[%s1109_s3] sm:$0xff]  }
  0x36   : > { %704 = vmatpush3.bf16.msra.mxu1 %v313_v4  ;;  %v775_v7 = vld [vmem:[%s1109_s3 + $0x8] sm:$0xff]   ;;  %v779_v10 = vld [vmem:[#allocation2 + $0x14] ss:$8 sps:$4 sm:$0xff]   ;;  %v781_v11 = vld [vmem:[#allocation2 + $0x10] ss:$8 sps:$4 sm:$0xff]   ;;  %vm386_vm5 = vcmask 261120  }
  0x37   : > { %s1131_s18 = smov (!%p289_p5, %s669_s18), 3  ;;  %709 = vmatprep.subr.bf16.mxu1 %v903_v0  ;;  %v776_v8 = vld [vmem:[#allocation2 + $0x4] ss:$8 sps:$4 sm:$0xff]   ;;  %v778_v9 = vld [vmem:[#allocation2] ss:$8 sps:$4 sm:$0xff]   ;;  %v905_v28 = vmov 0  }
  0x38   : > { %s670_s15 = sshll.u32 %s1131_s18, 3  ;;  %502 = vmatprep.subr.bf16.mxu0 %v776_v8  ;;  %v671_v12 = vld [vmem:[%s1108_s2] ss:$0 sm:$0xff]  ;;  %v782_v24 = vld [vmem:[#allocation2 + $0x24] ss:$8 sps:$4 sm:$0xff]   ;;  %534 = vmatprep.mubr.bf16.mxu0 %v905_v28  ;;  %vm498_vm8 = vcmask 523264  }
  0x39   : > { %s292_s19 = scalar_lea.vmem %s1106_s0, %s670_s15  ;;  %503 = vmatpush1.bf16.msra.mxu0 %v778_v9  ;;  %v784_v25 = vld [vmem:[#allocation2 + $0x20] ss:$8 sps:$4 sm:$0xff]   ;;  %v785_v26 = vld [vmem:[#allocation2 + $0x34] ss:$8 sps:$4 sm:$0xff]   ;;  %v787_v27 = vld [vmem:[#allocation2 + $0x30] ss:$8 sps:$4 sm:$0xff]  }
  0x3a   : > { %v296_v2 = vld [vmem:[%s292_s19] sm:$0xff]  ;;  %v297_v3 = vld [vmem:[%s292_s19 + $0x8] sm:$0xff]  ;;  %504 = vmatprep.subr.bf16.mxu0 %v779_v10  ;;  %v449_v42 = vshrl.u32 %v448_v41, 7  ;;  %s285_s13 = sand.u32 1, %s890_s25   ;;  %s697_s20 = sshll.u32 %s970_s28, 9 }
  0x3b   : > { %v298_v5 = vpack.c.bf16 %v297_v3, %v296_v2  ;;  %v673_v29 = vld [vmem:[%s1110_s4] ss:$0 sm:$0xff]  ;;  %s668_s19 = sshll.u32 %s285_s13, 5  ;;  %s1061_s8 = scalar_lea.hbm %s1113_s7, %s697_s20 }
  0x3c   : > { %v450_v43 = vsub.s32 0, %v449_v42  ;;  %v446_v44 = vld [vmem:[%s1112_s6] sm:$0x3]  ;;  %v454_v45 = vsub.s32 1, %v449_v42  ;;  %s287_s21 = scalar_lea.vmem [#allocation5], %s668_s19  ;;  %s1065_s28 = scalar_lea.sflag [#allocation4], %s285_s13 }
  0x3d   : > { %706 = vmatmul.mubr.msk.bf16.vlgmr.msra.gmra.mrb[0].mxu1 %vm307_vm2, %v298_v5  ;;  %505 = vmatpush1.bf16.msra.mxu0 %v781_v11  ;;  %s588_s22 = sshll.u32 %s287_s21, 4  ;;  %p1124_p9 = scmp.ne.s32.totalorder %s1117_s11, 0  ;;  %s1063_s22 = int_to_ptr.vmem [resolvable:$true] %s588_s22 }
  0x3e   : > { %713 = vmatprep.mubr.msk.bf16.mxu1 %vm904_vm0, %v903_v0  ;;  %710 = vmatpush3.bf16.msra.mxu1 %v774_v6  ;;  %v451_v46 = vrot.slane %v446_v44, %v450_v43  ;;  %v455_v47 = vrot.slane %v446_v44, %v454_v45  ;;  %s832_s9 = scalar_lea.vmem %s1063_s22, 512  ;;  %s906_s14 = smov [#allocation5]  }
  0x3f   : > { %711 = vmatprep.subr.bf16.mxu1 %v903_v0  ;;  %506 = vmatprep.subr.bf16.mxu0 %v782_v24  ;;  %p833_p6 = scmp.ne.s32.totalorder %s1063_s22, %s832_s9  ;;  %s836_s17 = sshll.u32 %s906_s14, 4  ;;  %s837_s17 = int_to_ptr.vmem [resolvable:$false] %s836_s17 }
  0x40   : > { %s838_s18 = scalar_lea.vmem %s837_s17, 1024  ;;  %p839_p2 = scmp.lt.s32.totalorder %s1063_s22, %s837_s17 }
  0x41   : > { %507 = vmatpush1.bf16.msra.mxu0 %v784_v25  ;;  %p834_p10 = pnand %p833_p6, %p1124_p9  ;;  %p840_p3 = scmp.lt.s32.totalorder %s838_s18, %s832_s9 }
  0x42   : > { %712 = vmatpush3.bf16.msra.mxu1 %v775_v7  ;;  %508 = vmatprep.subr.bf16.mxu0 %v785_v26 }
  0x43   : > { %p835_p12 = pneg %p834_p10  ;;  %p841_p4 = por %p840_p3, %p839_p2 }
  0x45   : > { %509 = vmatpush1.bf16.msra.mxu0 %v787_v27  ;;  %p842_p7 = pnand %p841_p4, %p835_p12 }
 0x110   : > { %v349_v13 = vpop.f32.mrb[0].mxu1 }
 0x111   : > { %v350_v14 = vadd.f32 %v671_v12, %v349_v13  ;;  %v707_v15 = vpop.f32.mrb[1].mxu1 }
 0x112   : > { %v352_v16 = vpop.f32.mrb[2].mxu1 }
 0x113   : > { %v358_v17 = vmul.f32 0.01, %v350_v14  ;;  %v353_v18 = vadd.f32 %v671_v12, %v352_v16  ;;  %v708_v19 = vpop.f32.mrb[3].mxu1  ;;  %vm356_vm3 = vcmp.gt.f32.partialorder %v350_v14, 0.0 }
 0x115   : > { %vm357_vm4 = vcmp.gt.f32.partialorder %v353_v18, 0.0  ;;  %v359_v20 = vmul.f32 0.01, %v353_v18  ;;  %v360_v21 = vsel %vm356_vm3, %v350_v14, %v358_v17 }
 0x117   : > { %v361_v22 = vsel %vm357_vm4, %v353_v18, %v359_v20 }
 0x118   : > { %v362_v23 = vpack.c.bf16 %v361_v22, %v360_v21 }
 0x11a   : > { %714 = vmatmul.mubr.msk.bf16.vlgmr.msra.gmra.mrb[4].mxu1 %vm386_vm5, %v362_v23 }
 0x1ed   : > { %v424_v30 = vpop.f32.mrb[4].mxu1 }
 0x1ee   : > { %v425_v31 = vadd.f32 %v673_v29, %v424_v30  ;;  %v715_v32 = vpop.f32.mrb[5].mxu1 }
 0x1ef   : > { %v427_v33 = vpop.f32.mrb[6].mxu1 }
 0x1f0   : > { %v433_v34 = vmul.f32 0.01, %v425_v31  ;;  %v428_v35 = vadd.f32 %v673_v29, %v427_v33  ;;  %v716_v36 = vpop.f32.mrb[7].mxu1  ;;  %vm431_vm6 = vcmp.gt.f32.partialorder %v425_v31, 0.0 }
 0x1f2   : > { %vm432_vm7 = vcmp.gt.f32.partialorder %v428_v35, 0.0  ;;  %v434_v37 = vmul.f32 0.01, %v428_v35  ;;  %v435_v38 = vsel %vm431_vm6, %v425_v31, %v433_v34 }
 0x1f4   : > { %v436_v39 = vsel %vm432_vm7, %v428_v35, %v434_v37 }
 0x1f5   : > { %v437_v40 = vpack.c.bf16 %v436_v39, %v435_v38 }
 0x1f7   : > { %685 = vmatmul.mubr.msk.bf16.vlgmr.msra.gmra.mrb[0].mxu0 %vm498_vm8, %v437_v40 }
 0x2ca   : > { %v536_v48 = vpop.f32.mrb[0].mxu0 }
 0x2cb   : > { %v537_v49 = vadd.f32 %v536_v48, %v451_v46  ;;  %v538_v50 = vpop.f32.mrb[1].mxu0 }
 0x2cc   : > { %v539_v51 = vadd.f32 %v538_v50, %v455_v47  ;;  %v540_v52 = vpop.f32.mrb[2].mxu0 }
 0x2cd   : > { %v686_v53 = vmul.f32 -1.442695, %v537_v49  ;;  %v541_v54 = vadd.f32 %v540_v52, %v451_v46  ;;  %v542_v55 = vpop.f32.mrb[3].mxu0 }
 0x2ce   : > { %v687_v56 = vmul.f32 -1.442695, %v539_v51  ;;  %v543_v57 = vadd.f32 %v542_v55, %v455_v47 }
 0x2cf   : > { %788 = vpow2.f32 %v686_v53  ;;  %v688_v58 = vmul.f32 -1.442695, %v541_v54 }
 0x2d0   : > { %790 = vpow2.f32 %v687_v56  ;;  %v689_v59 = vmul.f32 -1.442695, %v543_v57 }
 0x2d1   : > { %792 = vpow2.f32 %v688_v58 }
 0x2d2   : > { %794 = vpow2.f32 %v689_v59 }
 0x2d9   : > { %v789_v60 = vpop.eup %788 }
 0x2da   : > { %v791_v61 = vpop.eup %790  ;;  %v557_v62 = vadd.f32 1.0, %v789_v60 }
 0x2db   : > { %v793_v63 = vpop.eup %792  ;;  %v558_v0 = vadd.f32 1.0, %v791_v61 }
 0x2dc   : > { %v795_v1 = vpop.eup %794  ;;  %796 = vrcp.f32 %v557_v62  ;;  %v559_v2 = vadd.f32 1.0, %v793_v63 }
 0x2dd   : > { %798 = vrcp.f32 %v558_v0  ;;  %v560_v3 = vadd.f32 1.0, %v795_v1 }
 0x2de   : > { %800 = vrcp.f32 %v559_v2 }
 0x2df   : > { %802 = vrcp.f32 %v560_v3 }
 0x2e6   : > { %v797_v4 = vpop.eup %796 }
 0x2e7   : > { %v799_v5 = vpop.eup %798  ;;  %569 = vst [vmem:[%s287_s21] sm:$0xff] %v797_v4 }
 0x2e8   : > { %v801_v6 = vpop.eup %800  ;;  %570 = vst [vmem:[%s287_s21 + $0x8] sm:$0xff] %v799_v5 }
 0x2e9   : > { %v803_v7 = vpop.eup %802  ;;  %571 = vst [vmem:[%s287_s21 + $0x10] sm:$0xff] %v801_v6 }
 0x2ea   : > { %572 = vst [vmem:[%s287_s21 + $0x18] sm:$0xff] %v803_v7 }
 0x2eb   : > { %845 = shalt.err (!%p842_p7)
}
 0x2ec   : > { %s846_s15 = scalar_lea.hbm %s1061_s8, 512  ;;  %s850_s19 = scalar_lea.hbm %s1113_s7, 1024 }
 0x2ed   : > { %p847_p8 = scmp.ne.s32.totalorder %s1061_s8, %s846_s15  ;;  %p851_p1 = scmp.lt.u32.totalorder %s1061_s8, %s1113_s7 }
 0x2ee   : > { %p852_p0 = scmp.lt.u32.totalorder %s850_s19, %s846_s15  ;;  %p854_p6 = scmp.lt.u32.totalorder %s846_s15, %s1061_s8 }
 0x2ef   : > { %p848_p11 = pnand %p847_p8, %p1124_p9 }
 0x2f0   : > { %p853_p5 = por %p852_p0, %p851_p1 }
 0x2f1   : > { %p849_p13 = pneg %p848_p11 }
 0x2f2   : > { %p855_p10 = por %p854_p6, %p853_p5 }
 0x2f4   : > { %p856_p12 = pnand %p855_p10, %p849_p13 }
 0x2f6   : > { %859 = shalt.err (!%p856_p12)
}
 0x2f7   : > { %s907_s23 = smov 256   ;;  %s908_s29 = smov 16  }
 0x2f8   : > { %721 = dma.vmem_to_hbm [thread:$0]  (%p1124_p9), %s1063_s22, 512, %s1061_s8, %s1065_s28, %s907_s23, %s907_s23, %s908_s29  }
 0x2f9 PF: > { %p733_p2 = scmp.ge.s32.totalorder %s898_s27, 2  ;;  %s603_s9 = sand.u32 1, %s886_s24  }
 0x2fa   : > { %p1125_p3 = scmp.ne.s32.totalorder %s1118_s12, 0  ;;  %s604_s14 = scalar_lea.sflag [#allocation4], %s603_s9 }
 0x2fc   : > { %p728_p4 = pnand %p733_p2, %p1125_p3 }
 0x2fe   : > { %881 = dma.done.wait (!%p728_p4), %s604_s14, 512  }
 0x2ff   : > { %883 = vsyncadd (!%p728_p4), %s604_s14, 4294966784  ;;  %p18_p7 = scmp.ge.s32.totalorder %s974_s30, 4   ;;  %s1126_s24 = smov %s890_s25 }
 0x300   : > { %s1127_s25 = smov %s894_s26  ;;  %s1128_s26 = smov %s985_s10 }
 0x301   : > { %s1129_s27 = smov %s974_s30  ;;  %20 = sbr.rel (!%p18_p7) target bundleno = 4 (0x4), region = 88 }
 0x308   :  { %609 = vsyncpa [#allocation3], 1 }
 0x309   :  { %611 = vsyncpa [#allocation3 + $0x1], 1 }
 0x30a   :  { %612 = vsyncpa [#allocation4], 1 }
 0x30b   :  { %614 = vsyncpa [#allocation4 + $0x1], 1 }

</bundles_post_ra>
